<compile_context>
chip_gen: v5e
topology: v5e:2x2
jax: 0.10.0
libtpu: 0.0.40
codegen_flags: <defaults>
</compile_context>

<pallas_src>
import functools

import jax
import jax.numpy as jnp
from jax import lax
from jax.experimental import pallas as pl
from jax.experimental.pallas import tpu as pltpu


def _confidence_ce_tile_kernel(anchors_ref, peers_ref, counts_ref, ce_sum_ref,
                               *, inv_threshold, batch_size):
    t = pl.program_id(0)  # batch-reduction axis

    # Zero the resident accumulators on the first reduction step.
    @pl.when(t == 0)
    def _():
        counts_ref[...] = jnp.zeros_like(counts_ref)
        ce_sum_ref[...] = jnp.zeros_like(ce_sum_ref)

    a = anchors_ref[...].astype(jnp.float32)   # (TB, C) anchor logits
    p = peers_ref[...].astype(jnp.float32)     # (TB, C) peer logits
    tb, n_classes = a.shape

    # Rows past B (partial last tile) are masked out via the global row index.
    row_idx = lax.broadcasted_iota(jnp.int32, (tb, 1), 0) + t * tb
    valid = row_idx < batch_size                                   # (TB, 1) bool

    # Pseudolabel = argmax of anchor logits (same argmax as softmax, first-index ties).
    col = lax.broadcasted_iota(jnp.int32, (tb, n_classes), 1)
    a_max = jnp.max(a, axis=1, keepdims=True)
    target = jnp.min(jnp.where(a == a_max, col, n_classes), axis=1, keepdims=True)
    is_target = col == target                                      # (TB, C) bool

    # Confidence test without normalizing or dividing:
    #   max_prob = 1/sum(exp(a - a_max)) > thr  <=>  sum_exp < 1/thr.
    sum_exp = jnp.sum(jnp.exp(a - a_max), axis=1, keepdims=True)   # (TB, 1)
    mask = (sum_exp < inv_threshold) & valid                       # (TB, 1) bool

    # Cross entropy of peer logits at the pseudolabel: lse(p) - p[target].
    # `hit` picks exactly the target column, so the per-class column sum of
    # where(hit, lse - p, 0) is the per-class masked CE sum (no lane gather needed).
    p_max = jnp.max(p, axis=1, keepdims=True)
    lse = jnp.log(jnp.sum(jnp.exp(p - p_max), axis=1, keepdims=True)) + p_max  # (TB, 1)

    hit = is_target & mask                                         # (TB, C) bool
    cnt_tile = jnp.sum(jnp.where(hit, 1.0, 0.0), axis=0, keepdims=True)      # (1, C)
    ce_tile = jnp.sum(jnp.where(hit, lse - p, 0.0), axis=0, keepdims=True)   # (1, C)

    counts_ref[...] += cnt_tile
    ce_sum_ref[...] += ce_tile


def _vmem_capacity_bytes():
    try:
        info = pltpu.get_tpu_info()
        return int(getattr(info, "vmem_capacity_bytes", 64 << 20))
    except Exception:
        return 64 << 20


def confidence_based_ce(anchors_proj, peers_proj, *, threshold,
                        apply_class_balancing, tile_rows=None):
    """Pallas implementation of ConfidenceBasedCE.forward."""
    B, C = anchors_proj.shape
    itemsize = max(jnp.dtype(anchors_proj.dtype).itemsize,
                   jnp.dtype(peers_proj.dtype).itemsize)

    # Sublane alignment per dtype packing: 8 (f32), 16 (bf16), 32 (int8/fp8).
    sub = max(8, (8 * 4) // itemsize)

    # Tile sizing from lane-padded bytes, including in-kernel f32 intermediates.
    padded_c = ((C + 127) // 128) * 128
    in_row_bytes = padded_c * itemsize          # one input row, lane-padded
    f32_row_bytes = padded_c * 4
    # 2 inputs x 2 DMA buffers + ~6 live f32/i32 intermediates inside the body.
    per_row_bytes = 4 * in_row_bytes + 6 * f32_row_bytes

    vmem_cap = _vmem_capacity_bytes()
    if vmem_cap >= (100 << 20):                 # v5e / v6e: 128 MiB VMEM
        ws_budget = 48 << 20
        vmem_limit = 96 << 20
    else:                                       # v7x: 64 MiB VMEM
        ws_budget = 24 << 20
        vmem_limit = 48 << 20

    if tile_rows is None:
        tb_cap = max(sub, min(8192, ws_budget // per_row_bytes))
        tb_cap = (tb_cap // sub) * sub
        TB = B if B <= tb_cap else tb_cap
    else:
        TB = int(tile_rows)
        if TB < B:
            TB = max(8, (TB // 8) * 8)          # block dims must be 8-divisible
        else:
            TB = B

    T = -(-B // TB)                             # number of batch tiles

    kernel = functools.partial(
        _confidence_ce_tile_kernel,
        inv_threshold=(float(1.0 / threshold) if threshold > 0 else float("inf")),
        batch_size=B,
    )

    counts_out, ce_out = pl.pallas_call(
        kernel,
        out_shape=(
            jax.ShapeDtypeStruct((1, C), jnp.float32),   # per-class confident counts
            jax.ShapeDtypeStruct((1, C), jnp.float32),   # per-class masked CE sums
        ),
        grid_spec=pltpu.PrefetchScalarGridSpec(
            num_scalar_prefetch=0,
            grid=(T,),
            in_specs=[
                pl.BlockSpec((TB, C), lambda t: (t, 0)),
                pl.BlockSpec((TB, C), lambda t: (t, 0)),
            ],
            out_specs=(
                pl.BlockSpec((1, C), lambda t: (0, 0)),
                pl.BlockSpec((1, C), lambda t: (0, 0)),
            ),
        ),
        compiler_params=pltpu.CompilerParams(
            dimension_semantics=("arbitrary",),
            vmem_limit_bytes=vmem_limit,
        ),
        cost_estimate=pl.CostEstimate(
            flops=10 * B * C,
            transcendentals=2 * B * C + 2 * B,          # 2 exps/elem + per-row log
            bytes_accessed=2 * B * padded_c * itemsize + 2 * C * 4,
        ),
    )(anchors_proj, peers_proj)

    # O(C) finalize in plain JAX.
    counts = counts_out.reshape(C)                      # (C,)
    ce_sum = ce_out.reshape(C)                          # (C,)
    n_f = jnp.sum(counts)
    n = n_f.astype(jnp.int32)
    n_miss = jnp.sum((counts == 0.0).astype(jnp.int32))
    if apply_class_balancing:
        weight = jnp.where(counts > 0.0, n_f / jnp.maximum(counts, 1.0),
                           jnp.ones_like(counts))
    else:
        weight = jnp.ones((C,), jnp.float32)
    loss = jnp.sum(weight * ce_sum) / jnp.sum(weight * counts)
    return loss, n, n_miss, (weight if apply_class_balancing else None)


def _reference_confidence_ce(anchors, peers, threshold, apply_class_balancing):
    """Pure-JAX reference mirroring the PyTorch module exactly."""
    a = anchors.astype(jnp.float32)
    p = peers.astype(jnp.float32)
    C = a.shape[1]
    prob = jax.nn.softmax(a, axis=1)
    max_prob = prob.max(axis=1)
    target = prob.argmax(axis=1)
    mask = max_prob > threshold
    counts = jnp.sum(jax.nn.one_hot(target, C) * mask[:, None].astype(jnp.float32), axis=0)
    n_f = counts.sum()
    n_miss = jnp.sum((counts == 0).astype(jnp.int32))
    if apply_class_balancing:
        weight = jnp.where(counts > 0, n_f / jnp.maximum(counts, 1.0), 1.0)
    else:
        weight = jnp.ones((C,), jnp.float32)
    logp = jax.nn.log_softmax(p, axis=1)
    ce = -jnp.take_along_axis(logp, target[:, None], axis=1)[:, 0]
    w_t = weight[target]
    m = mask.astype(jnp.float32)
    loss = jnp.sum(m * w_t * ce) / jnp.sum(m * w_t)
    return loss, n_f.astype(jnp.int32), n_miss, (weight if apply_class_balancing else None)


if __name__ == "__main__":
    key = jax.random.PRNGKey(0)
    k_a, k_p, k_a2, k_p2 = jax.random.split(key, 4)

    # Small (n_batch, n_classes) case.
    B, C = 8, 10
    anchors = jax.random.normal(k_a, (B, C), jnp.float32) * 4.0
    peers = jax.random.normal(k_p, (B, C), jnp.float32)

    loss, n, n_miss, weight = confidence_based_ce(
        anchors, peers, threshold=0.5, apply_class_balancing=True)
    jax.block_until_ready((loss, n, n_miss, weight))

    rl, rn, rm, rw = _reference_confidence_ce(anchors, peers, 0.5, True)
    assert jnp.isfinite(loss), f"loss not finite: {loss}"
    assert jnp.allclose(loss, rl, rtol=1e-5, atol=1e-5), (loss, rl)
    assert int(n) == int(rn) and int(n_miss) == int(rm)
    assert jnp.allclose(weight, rw, rtol=1e-5, atol=1e-5)

    # Larger case exercising the batch grid and partial-tile masking
    # (B=300 with forced 64-row tiles -> grid (5,), last tile partial).
    B2, C2 = 300, 10
    anchors2 = jax.random.normal(k_a2, (B2, C2), jnp.float32) * 4.0
    peers2 = jax.random.normal(k_p2, (B2, C2), jnp.float32)
    loss2, n2, miss2, w2 = confidence_based_ce(
        anchors2, peers2, threshold=0.5, apply_class_balancing=True, tile_rows=64)
    jax.block_until_ready((loss2, n2, miss2, w2))
    rl2, rn2, rm2, rw2 = _reference_confidence_ce(anchors2, peers2, 0.5, True)
    assert jnp.allclose(loss2, rl2, rtol=1e-4, atol=1e-5), (loss2, rl2)
    assert int(n2) == int(rn2) and int(miss2) == int(rm2)
    assert jnp.allclose(w2, rw2, rtol=1e-4, atol=1e-4)

    # bf16 inputs (production dtype): kernel upcasts in VMEM, reference upcasts the
    # same bf16 values, so results must match.
    anchors3 = anchors2.astype(jnp.bfloat16)
    peers3 = peers2.astype(jnp.bfloat16)
    loss3, n3, miss3, w3 = confidence_based_ce(
        anchors3, peers3, threshold=0.5, apply_class_balancing=True)
    jax.block_until_ready((loss3, n3, miss3, w3))
    rl3, rn3, rm3, rw3 = _reference_confidence_ce(anchors3, peers3, 0.5, True)
    assert jnp.allclose(loss3, rl3, rtol=1e-4, atol=1e-4), (loss3, rl3)
    assert int(n3) == int(rn3) and int(miss3) == int(rm3)
    assert jnp.allclose(w3, rw3, rtol=1e-4, atol=1e-4)

    # No-balancing path returns weight=None like PyTorch.
    loss4, n4, miss4, w4 = confidence_based_ce(
        anchors, peers, threshold=0.5, apply_class_balancing=False)
    jax.block_until_ready((loss4, n4, miss4))
    rl4, _, _, _ = _reference_confidence_ce(anchors, peers, 0.5, False)
    assert w4 is None and jnp.allclose(loss4, rl4, rtol=1e-5, atol=1e-5)

    print("KERNEL_OK")
</pallas_src>

<mosaic_0001>
module attributes {stable_mosaic.version = 11 : i64} {
  func.func @_confidence_ce_tile_kernel(%arg0: i32, %arg1: memref<8x10xf32, #tpu.memory_space<vmem>>, %arg2: memref<8x10xf32, #tpu.memory_space<vmem>>, %arg3: memref<1x10xf32, #tpu.memory_space<vmem>>, %arg4: memref<1x10xf32, #tpu.memory_space<vmem>>) attributes {dimension_semantics = [#tpu.dimension_semantics<arbitrary>], iteration_bounds = array<i64: 1>, scalar_prefetch = 0 : i64, scratch_operands = 0 : i64, tpu.core_type = #tpu.core_type<tc>, window_params = [{transform_indices = @transform_0, window_bounds = array<i64: 8, 10>}, {transform_indices = @transform_1, window_bounds = array<i64: 8, 10>}, {pipeline_mode = #tpu.pipeline_mode<synchronous>, transform_indices = @transform_2, window_bounds = array<i64: 1, 10>}, {pipeline_mode = #tpu.pipeline_mode<synchronous>, transform_indices = @transform_3, window_bounds = array<i64: 1, 10>}]} {
    %c0_i32 = arith.constant 0 : i32
    %0 = arith.cmpi eq, %arg0, %c0_i32 : i32
    %1 = arith.extui %0 : i1 to i32
    %c0_i32_0 = arith.constant 0 : i32
    %2 = arith.cmpi ne, %1, %c0_i32_0 : i32
    scf.if %2 {
      %cst_23 = arith.constant 0.000000e+00 : f32
      %58 = vector.broadcast %cst_23 : f32 to vector<1x10xf32>
      %c0_24 = arith.constant 0 : index
      %c0_25 = arith.constant 0 : index
      %59 = vector.load %arg3[%c0_24, %c0_25] : memref<1x10xf32, #tpu.memory_space<vmem>>, vector<1x10xf32>
      tpu.vector_store %arg3[%c0_24, %c0_25], %58 {strides = array<i32>} : memref<1x10xf32, #tpu.memory_space<vmem>>, vector<1x10xf32>,
      %cst_26 = arith.constant 0.000000e+00 : f32
      %60 = vector.broadcast %cst_26 : f32 to vector<1x10xf32>
      %c0_27 = arith.constant 0 : index
      %c0_28 = arith.constant 0 : index
      %61 = vector.load %arg4[%c0_27, %c0_28] : memref<1x10xf32, #tpu.memory_space<vmem>>, vector<1x10xf32>
      tpu.vector_store %arg4[%c0_27, %c0_28], %60 {strides = array<i32>} : memref<1x10xf32, #tpu.memory_space<vmem>>, vector<1x10xf32>,
    } else {
    }
    %c0 = arith.constant 0 : index
    %c0_1 = arith.constant 0 : index
    %3 = vector.load %arg1[%c0, %c0_1] : memref<8x10xf32, #tpu.memory_space<vmem>>, vector<8x10xf32>
    %c0_2 = arith.constant 0 : index
    %c0_3 = arith.constant 0 : index
    %4 = vector.load %arg2[%c0_2, %c0_3] : memref<8x10xf32, #tpu.memory_space<vmem>>, vector<8x10xf32>
    %5 = tpu.iota {dimensions = array<i32: 0>} : vector<8x1xi32>
    %c8_i32 = arith.constant 8 : i32
    %6 = arith.muli %arg0, %c8_i32 : i32
    %7 = vector.broadcast %6 : i32 to vector<8x1xi32>
    %8 = arith.addi %5, %7 : vector<8x1xi32>
    %c8_i32_4 = arith.constant 8 : i32
    %9 = vector.broadcast %c8_i32_4 : i32 to vector<8x1xi32>
    %10 = arith.cmpi slt, %8, %9 : vector<8x1xi32>
    %11 = tpu.iota {dimensions = array<i32: 1>} : vector<8x10xi32>
    %cst = arith.constant dense<0xFF800000> : vector<8xf32>
    %12 = vector.multi_reduction <maximumf>, %3, %cst [1] : vector<8x10xf32> to vector<8xf32>
    %13 = vector.shape_cast %12 : vector<8xf32> to vector<8x1xf32>
    %14 = vector.broadcast %13 : vector<8x1xf32> to vector<8x10xf32>
    %15 = arith.cmpf oeq, %3, %14 : vector<8x10xf32>
    %c10_i32 = arith.constant 10 : i32
    %16 = vector.broadcast %c10_i32 : i32 to vector<8x10xi32>
    %17 = arith.select %15, %11, %16 : vector<8x10xi1>, vector<8x10xi32>
    %cst_5 = arith.constant dense<2147483647> : vector<8xi32>
    %18 = vector.multi_reduction <minsi>, %17, %cst_5 [1] : vector<8x10xi32> to vector<8xi32>
    %19 = vector.shape_cast %18 : vector<8xi32> to vector<8x1xi32>
    %20 = vector.broadcast %19 : vector<8x1xi32> to vector<8x10xi32>
    %21 = arith.cmpi eq, %11, %20 : vector<8x10xi32>
    %22 = vector.broadcast %13 : vector<8x1xf32> to vector<8x10xf32>
    %23 = arith.subf %3, %22 : vector<8x10xf32>
    %24 = math.exp %23 : vector<8x10xf32>
    %cst_6 = arith.constant dense<0.000000e+00> : vector<8xf32>
    %25 = vector.multi_reduction <add>, %24, %cst_6 [1] : vector<8x10xf32> to vector<8xf32>
    %26 = vector.shape_cast %25 : vector<8xf32> to vector<8x1xf32>
    %cst_7 = arith.constant 2.000000e+00 : f32
    %27 = vector.broadcast %cst_7 : f32 to vector<8x1xf32>
    %28 = arith.cmpf olt, %26, %27 : vector<8x1xf32>
    %29 = arith.andi %28, %10 : vector<8x1xi1>
    %cst_8 = arith.constant dense<0xFF800000> : vector<8xf32>
    %30 = vector.multi_reduction <maximumf>, %4, %cst_8 [1] : vector<8x10xf32> to vector<8xf32>
    %31 = vector.shape_cast %30 : vector<8xf32> to vector<8x1xf32>
    %32 = vector.broadcast %31 : vector<8x1xf32> to vector<8x10xf32>
    %33 = arith.subf %4, %32 : vector<8x10xf32>
    %34 = math.exp %33 : vector<8x10xf32>
    %cst_9 = arith.constant dense<0.000000e+00> : vector<8xf32>
    %35 = vector.multi_reduction <add>, %34, %cst_9 [1] : vector<8x10xf32> to vector<8xf32>
    %36 = vector.shape_cast %35 : vector<8xf32> to vector<8x1xf32>
    %37 = math.log %36 : vector<8x1xf32>
    %38 = arith.addf %37, %31 : vector<8x1xf32>
    %39 = vector.broadcast %29 : vector<8x1xi1> to vector<8x10xi1>
    %40 = arith.andi %21, %39 : vector<8x10xi1>
    %cst_10 = arith.constant 1.000000e+00 : f32
    %cst_11 = arith.constant 0.000000e+00 : f32
    %41 = vector.broadcast %cst_10 : f32 to vector<8x10xf32>
    %42 = vector.broadcast %cst_11 : f32 to vector<8x10xf32>
    %43 = arith.select %40, %41, %42 : vector<8x10xi1>, vector<8x10xf32>
    %cst_12 = arith.constant dense<0.000000e+00> : vector<10xf32>
    %44 = vector.multi_reduction <add>, %43, %cst_12 [0] : vector<8x10xf32> to vector<10xf32>
    %45 = vector.shape_cast %44 : vector<10xf32> to vector<1x10xf32>
    %46 = vector.broadcast %38 : vector<8x1xf32> to vector<8x10xf32>
    %47 = arith.subf %46, %4 : vector<8x10xf32>
    %cst_13 = arith.constant 0.000000e+00 : f32
    %48 = vector.broadcast %cst_13 : f32 to vector<8x10xf32>
    %49 = arith.select %40, %47, %48 : vector<8x10xi1>, vector<8x10xf32>
    %cst_14 = arith.constant dense<0.000000e+00> : vector<10xf32>
    %50 = vector.multi_reduction <add>, %49, %cst_14 [0] : vector<8x10xf32> to vector<10xf32>
    %51 = vector.shape_cast %50 : vector<10xf32> to vector<1x10xf32>
    %c0_15 = arith.constant 0 : index
    %c0_16 = arith.constant 0 : index
    %52 = vector.load %arg3[%c0_15, %c0_16] : memref<1x10xf32, #tpu.memory_space<vmem>>, vector<1x10xf32>
    %53 = arith.addf %52, %45 : vector<1x10xf32>
    %c0_17 = arith.constant 0 : index
    %c0_18 = arith.constant 0 : index
    %54 = vector.load %arg3[%c0_17, %c0_18] : memref<1x10xf32, #tpu.memory_space<vmem>>, vector<1x10xf32>
    tpu.vector_store %arg3[%c0_17, %c0_18], %53 {strides = array<i32>} : memref<1x10xf32, #tpu.memory_space<vmem>>, vector<1x10xf32>,
    %c0_19 = arith.constant 0 : index
    %c0_20 = arith.constant 0 : index
    %55 = vector.load %arg4[%c0_19, %c0_20] : memref<1x10xf32, #tpu.memory_space<vmem>>, vector<1x10xf32>
    %56 = arith.addf %55, %51 : vector<1x10xf32>
    %c0_21 = arith.constant 0 : index
    %c0_22 = arith.constant 0 : index
    %57 = vector.load %arg4[%c0_21, %c0_22] : memref<1x10xf32, #tpu.memory_space<vmem>>, vector<1x10xf32>
    tpu.vector_store %arg4[%c0_21, %c0_22], %56 {strides = array<i32>} : memref<1x10xf32, #tpu.memory_space<vmem>>, vector<1x10xf32>,
    return
  }
  func.func @transform_0(%arg0: i32) -> (i32, i32) {
    %c0_i32 = arith.constant 0 : i32
    %c0_i32_0 = arith.constant 0 : i32
    return %arg0, %c0_i32 : i32, i32
  }
  func.func @transform_1(%arg0: i32) -> (i32, i32) {
    %c0_i32 = arith.constant 0 : i32
    %c0_i32_0 = arith.constant 0 : i32
    return %arg0, %c0_i32 : i32, i32
  }
  func.func @transform_2(%arg0: i32) -> (i32, i32) {
    %c0_i32 = arith.constant 0 : i32
    %c0_i32_0 = arith.constant 0 : i32
    %c0_i32_1 = arith.constant 0 : i32
    return %c0_i32, %c0_i32_0 : i32, i32
  }
  func.func @transform_3(%arg0: i32) -> (i32, i32) {
    %c0_i32 = arith.constant 0 : i32
    %c0_i32_0 = arith.constant 0 : i32
    %c0_i32_1 = arith.constant 0 : i32
    return %c0_i32, %c0_i32_0 : i32, i32
  }
}

</mosaic_0001>

<bundles_post_ra>
// kernel: tpu_custom_call.1
= control target key start
LH: loop header
LB: loop body
LE: loop exit
PB: predicated region body
PF: predicated region fallthrough
CT: control target
= control target key end

     0   :  { %9 = vsyncpa [#allocation3], 0  ;;  %s326_s0 = inlined_call_operand.hbm [shape: f32[8,10], index: 0, kind: input, shape index: {}]   ;;  %s327_s1 = inlined_call_operand.hbm [shape: f32[8,10], index: 1, kind: input, shape index: {}]   ;;  %s328_s2 = inlined_call_operand.hbm [shape: f32[1,10], index: 2, kind: output, shape index: {0}]   ;;  %s329_s3 = inlined_call_operand.hbm [shape: f32[1,10], index: 3, kind: output, shape index: {1}]  }
   0x1   :  { %10 = vsyncpa [#allocation6], 0 }
   0x2   :  { %11 = vsyncpa [#allocation4], 0 }
   0x3   :  { %12 = vsyncpa [#allocation9], 0  ;;  %s18_s14 = sshll.u32 %s326_s0, 4  ;;  %s278_s15 = smov [#allocation2]   ;;  %s19_s14 = int_to_ptr.hbm [resolvable:$true] %s18_s14 }
   0x4   :  { %s20_s16 = sshll.u32 %s278_s15, 4  ;;  %s29_s19 = sshll.u32 %s327_s1, 4  ;;  %s21_s16 = int_to_ptr.vmem [resolvable:$true] %s20_s16  ;;  %s30_s19 = int_to_ptr.hbm [resolvable:$true] %s29_s19 }
   0x5   :  { %23 = dma.hbm_to_vmem [thread:$0]  %s19_s14, 128, %s21_s16, [#allocation3]  }
   0x6   :  { %s279_s20 = smov [#allocation5]  }
   0x7   :  { %s31_s21 = sshll.u32 %s279_s20, 4  ;;  %s32_s21 = int_to_ptr.vmem [resolvable:$true] %s31_s21 }
   0x8   :  { %34 = dma.hbm_to_vmem [thread:$0]  %s30_s19, 128, %s32_s21, [#allocation6]  }
   0x9   :  { %270 = dma.done.wait [#allocation3], 128  }
   0xa   :  { %271 = vsyncadd [#allocation3], 4294967168 }
   0xb   :  { %272 = dma.done.wait [#allocation6], 128  }
   0xc   :  { %273 = vsyncadd [#allocation6], 4294967168  ;;  %vm60_vm0 = vcmask 80896   ;;  %v50_v0 = vld [vmem:[#allocation2] sm:$0xff]  ;;  %v51_v2 = vld [vmem:[#allocation5] sm:$0xff]  ;;  %v58_v4 = vlaneseq  ;;  %vm47_vm3 = vcmask 73728  }
   0xd   :  { %v61_v1 = vsel %vm60_vm0, %v50_v0, -inf  ;;  %v90_v3 = vsel %vm60_vm0, %v51_v2, -inf  ;;  %v280_v24 = vmov 0.0   ;;  %s281_s0 = smov [#allocation7]   ;;  %s136_s24 = sshll.u32 %s328_s2, 4  ;;  %s137_s24 = int_to_ptr.hbm [resolvable:$true] %s136_s24 }
   0xe   :  { %62 = vmax.xlane.f32.xlu0 %v61_v1  ;;  %v59_v5 = vand.u32 127, %v58_v4  ;;  %48 = vst.msk [vmem:[#allocation7] sm:$0x1] %vm47_vm3, %v280_v24  ;;  %s134_s1 = sshll.u32 %s281_s0, 4  ;;  %s282_s25 = smov [#allocation8]   ;;  %s135_s1 = int_to_ptr.vmem [resolvable:$true] %s134_s1 }
   0xf   :  { %49 = vst.msk [vmem:[#allocation8] sm:$0x1] %vm47_vm3, %v280_v24  ;;  %s145_s26 = sshll.u32 %s282_s25, 4  ;;  %s147_s29 = sshll.u32 %s329_s3, 4  ;;  %s146_s26 = int_to_ptr.vmem [resolvable:$true] %s145_s26  ;;  %s148_s29 = int_to_ptr.hbm [resolvable:$true] %s147_s29 }
  0x15   :  { %v122_v50 = vld [vmem:[#allocation7] sm:$0x1] }
  0x16   :  { %91 = vmax.xlane.f32.xlu0 %v90_v3  ;;  %v126_v51 = vld [vmem:[#allocation8] sm:$0x1] }
  0x81   :  { %v63_v6 = vpop.xlane.xlu0 %62 }
  0x82   :  { %vm64_vm1 = vcmp.eq.f32.partialorder %v50_v0, %v63_v6  ;;  %v82_v16 = vsub.f32 %v50_v0, %v63_v6 }
  0x83   :  { %v65_v7 = vsel %vm64_vm1, %v59_v5, 10 }
  0x84   :  { %v66_v8 = vsel %vm60_vm0, %v65_v7, 2147483647  ;;  %v83_v18 = vmul.f32 1.442695, %v82_v16 }
  0x85   :  { %v68_v9 = vshra.s32 %v66_v8, 16  ;;  %v67_v17 = vand.u32 65535, %v66_v8 }
  0x87   :  { %v70_v10 = vcvt.s32.f32 %v68_v9  ;;  %v69_v20 = vcvt.s32.f32 %v67_v17 }
  0x89   :  { %71 = vmin.xlane.f32.xlu1 %v70_v10  ;;  %v92_v11 = vpop.xlane.xlu0 %91 }
  0x8a   :  { %v93_v12 = vsub.f32 %v51_v2, %v92_v11 }
  0x8c   :  { %v94_v13 = vmul.f32 1.442695, %v93_v12 }
  0x8e   :  { %168 = vpow2.f32 %v94_v13 }
  0x8f   :  { %170 = vpow2.f32 %v83_v18 }
  0x94   :  { %v169_v14 = vpop.eup %168 }
  0x95   :  { %v96_v15 = vsel %vm60_vm0, %v169_v14, 0.0  ;;  %v171_v22 = vpop.eup %170 }
  0x96   :  { %97 = vadd.xlane.f32.xlu1 %v96_v15  ;;  %v85_v23 = vsel %vm60_vm0, %v171_v22, 0.0 }
  0xfc   :  { %v72_v19 = vpop.xlane.xlu1 %71 }
  0xfd   :  { %vm73_vm2 = vcmp.eq.f32.partialorder %v70_v10, %v72_v19  ;;  %v78_v27 = vcvt.f32.s32 %v72_v19 }
  0xfe   :  { %v74_v21 = vsel %vm73_vm2, %v69_v20, inf }
  0xff   :  { %75 = vmin.xlane.f32.xlu2 %v74_v21  ;;  %v79_v31 = vshll.u32 %v78_v27, 16 }
 0x107   :  { %86 = vadd.xlane.f32.xlu2 %v85_v23 }
 0x109   :  { %v98_v25 = vpop.xlane.xlu1 %97 }
 0x10a   :  { %172 = vlog2.f32 %v98_v25 }
 0x110   :  { %v173_v26 = vpop.eup %172 }
 0x111   :  { %v100_v29 = vmul.f32 0.6931472, %v173_v26 }
 0x113   :  { %v101_v32 = vadd.f32 %v100_v29, %v92_v11 }
 0x115   :  { %v113_v35 = vsub.f32 %v101_v32, %v51_v2 }
 0x172   :  { %v76_v28 = vpop.xlane.xlu2 %75 }
 0x173   :  { %v77_v30 = vcvt.f32.s32 %v76_v28 }
 0x175   :  { %v80_v33 = vadd.s32 %v79_v31, %v77_v30 }
 0x177   :  { %vm81_vm4 = vcmp.eq.s32.totalorder %v59_v5, %v80_v33 }
 0x17a   :  { %v87_v34 = vpop.xlane.xlu2 %86 }
 0x17b   :  { %vm88_vm5 = vcmp.lt.f32.partialorder %v87_v34, 2.0 }
 0x17c   :  { %vm104_vm6 = vmand %vm81_vm4, %vm88_vm5 }
 0x17d   :  { %v105_v36 = vsel %vm104_vm6, 1.0, %v280_v24  ;;  %v114_v37 = vsel %vm104_vm6, %v113_v35, 0.0 }
 0x17e   :  { %v106_v38 = vsel %vm60_vm0, %v105_v36, 0.0  ;;  %v115_v39 = vsel %vm60_vm0, %v114_v37, 0.0 }
 0x17f   :  { %v107_v40 = vrot.slane %v106_v38, 4  ;;  %v116_v41 = vrot.slane %v115_v39, 4 }
 0x181   :  { %v108_v42 = vadd.f32 %v107_v40, %v106_v38  ;;  %v117_v43 = vadd.f32 %v116_v41, %v115_v39 }
 0x183   :  { %v109_v44 = vrot.slane %v108_v42, 2  ;;  %v118_v45 = vrot.slane %v117_v43, 2 }
 0x185   :  { %v110_v46 = vadd.f32 %v109_v44, %v108_v42  ;;  %v119_v47 = vadd.f32 %v118_v45, %v117_v43 }
 0x187   :  { %v111_v48 = vrot.slane %v110_v46, 1  ;;  %v120_v49 = vrot.slane %v119_v47, 1 }
 0x189   :  { %v112_v52 = vadd.f32 %v111_v48, %v110_v46  ;;  %v121_v53 = vadd.f32 %v120_v49, %v119_v47 }
 0x18b   :  { %v123_v54 = vadd.f32 %v122_v50, %v112_v52  ;;  %v127_v55 = vadd.f32 %v126_v51, %v121_v53 }
 0x18d   :  { %125 = vst.msk [vmem:[#allocation7] sm:$0x1] %vm47_vm3, %v123_v54 }
 0x18e   :  { %128 = vst.msk [vmem:[#allocation8] sm:$0x1] %vm47_vm3, %v127_v55  ;;  %139 = dma.vmem_to_hbm [thread:$0]  %s135_s1, 16, %s137_s24, [#allocation4]  }
 0x18f   :  { %150 = dma.vmem_to_hbm [thread:$0]  %s146_s26, 16, %s148_s29, [#allocation9]  }
 0x190   :  { %274 = dma.done.wait [#allocation4], 16  }
 0x191   :  { %275 = vsyncadd [#allocation4], 4294967280 }
 0x192   :  { %276 = dma.done.wait [#allocation9], 16  }
 0x193   :  { %277 = vsyncadd [#allocation9], 4294967280 }
 0x194   :  { %159 = vsyncpa [#allocation3], 1 }
 0x195   :  { %160 = vsyncpa [#allocation6], 1 }
 0x196   :  { %161 = vsyncpa [#allocation4], 1 }
 0x197   :  { %162 = vsyncpa [#allocation9], 1 }

</bundles_post_ra>
